<compile_context>
chip_gen: v7x
topology: tpu7x:2x2x1
jax: 0.10.0
libtpu: 0.0.40
codegen_flags: <defaults>
</compile_context>

<pallas_src>
import jax
import jax.numpy as jnp
from jax import lax
from jax.experimental import pallas as pl
from jax.experimental.pallas import tpu as pltpu


# ----------------------------------------------------------------------------
# Kernels
# ----------------------------------------------------------------------------
def _linear_kernel(x_ref, w_ref, b_ref, o_ref):
    # x_ref: (TR, C) VMEM   w_ref: (C, K) VMEM   b_ref: (1, 1) SMEM   o_ref: (TR, K)
    acc = jnp.dot(x_ref[...], w_ref[...], preferred_element_type=jnp.float32)  # MXU
    o_ref[...] = (acc + b_ref[0, 0]).astype(o_ref.dtype)


def _make_linear_reduce_kernel(C, tc, needs_mask):
    """Row-tiled matvec with a K-reduction grid axis (axis 1, 'arbitrary')."""

    def kernel(x_ref, w_ref, b_ref, o_ref, acc_ref):
        kk = pl.program_id(1)

        @pl.when(kk == 0)
        def _():
            acc_ref[...] = jnp.zeros_like(acc_ref)

        x = x_ref[...]
        if needs_mask:
            # Last K block is partial: zero the out-of-range lanes so stale
            # VMEM (possibly NaN/Inf) never reaches the accumulator.  The
            # weight is also zero-padded wrapper-side, so 0 * 0 == 0 exactly.
            col = lax.broadcasted_iota(jnp.int32, x.shape, 1)
            x = jnp.where(col < (C - kk * tc), x, jnp.zeros_like(x))

        acc_ref[...] += jnp.dot(x, w_ref[...], preferred_element_type=jnp.float32)

        @pl.when(kk == pl.num_programs(1) - 1)
        def _():
            o_ref[...] = (acc_ref[...] + b_ref[0, 0]).astype(o_ref.dtype)

    return kernel


# ----------------------------------------------------------------------------
# Tiled linear:  y = x2 @ w2 + b        x2: (R, C), w2: (C, K), b: (1, 1)
# ----------------------------------------------------------------------------
def _pallas_linear(x2, w2, b2, *, block_rows, block_cols):
    R, C = x2.shape
    K = w2.shape[1]
    out_dtype = x2.dtype

    # ---- reduction (column) tiling ----------------------------------------
    block_cols = max(128, (block_cols // 128) * 128)   # keep blocks (8,128)-legal
    if C <= block_cols:
        tc, nct, needs_mask = C, 1, False
    else:
        tc = block_cols
        nct = pl.cdiv(C, tc)
        needs_mask = (C % tc) != 0
        if needs_mask:
            # Weight is tiny ((C, K)); padding it is negligible and guarantees
            # the weight block is never partial.
            w2 = jnp.pad(w2, ((0, nct * tc - C), (0, 0)))

    # ---- row tiling --------------------------------------------------------
    # Cap the input tile at ~4 MiB f32 (double-buffered: ~8 MiB of VMEM) —
    # enough to hit HBM roofline on v5e/v6e/v7x, safe under every scoped-VMEM
    # default including v7x's 64 MiB physical VMEM.
    tile_elems = (4 << 20) // 4
    tb_cap = max(8, (tile_elems // tc) // 8 * 8)
    if R <= 8:
        tr = R                                   # single block == full dim
    else:
        # Aim for >= 2 row tiles so "parallel" can shard across v7x's 2 TCs.
        half = ((R + 1) // 2 + 7) // 8 * 8       # ~R/2 rounded up to mult of 8
        tr = min(block_rows, tb_cap, half)
        tr = max(8, (tr // 8) * 8)               # (8,128) rule for non-full blocks
    nrt = pl.cdiv(R, tr)

    cost = pl.CostEstimate(
        flops=2 * R * C * K,
        bytes_accessed=(R * C + R * K) * x2.dtype.itemsize
        + w2.size * w2.dtype.itemsize,
        transcendentals=0,
    )

    if nct == 1:
        grid_spec = pltpu.PrefetchScalarGridSpec(
            num_scalar_prefetch=0,
            grid=(nrt,),
            in_specs=[
                pl.BlockSpec((tr, C), lambda i: (i, 0)),              # batch tiles
                pl.BlockSpec((C, K), lambda i: (0, 0)),               # resident weight
                pl.BlockSpec(memory_space=pltpu.MemorySpace.SMEM),    # bias scalar
            ],
            out_specs=pl.BlockSpec((tr, K), lambda i: (i, 0)),
        )
        kernel = _linear_kernel
        dims = ("parallel",)
    else:
        grid_spec = pltpu.PrefetchScalarGridSpec(
            num_scalar_prefetch=0,
            grid=(nrt, nct),                                          # reduction last
            in_specs=[
                pl.BlockSpec((tr, tc), lambda i, j: (i, j)),
                pl.BlockSpec((tc, K), lambda i, j: (j, 0)),
                pl.BlockSpec(memory_space=pltpu.MemorySpace.SMEM),
            ],
            out_specs=pl.BlockSpec((tr, K), lambda i, j: (i, 0)),
            scratch_shapes=[pltpu.VMEM((tr, K), jnp.float32)],
        )
        kernel = _make_linear_reduce_kernel(C, tc, needs_mask)
        dims = ("parallel", "arbitrary")

    return pl.pallas_call(
        kernel,
        out_shape=jax.ShapeDtypeStruct((R, K), out_dtype),
        grid_spec=grid_spec,
        compiler_params=pltpu.CompilerParams(dimension_semantics=dims),
        cost_estimate=cost,
    )(x2, w2, b2)


# ----------------------------------------------------------------------------
# MixingModel forward
# ----------------------------------------------------------------------------
def mixing_model_forward(x, weight, bias, *, block_rows=8192, block_cols=2048,
                         xla_fastpath_elems=65536):
    """MixingModel forward.

    x: (..., N), weight: (1, N) (PyTorch nn.Linear layout), bias: (1,).
    Returns Linear(x).squeeze() — all size-1 dims removed, scalar for a single row.
    """
    orig_shape = x.shape
    N = orig_shape[-1]
    x2d = x.reshape(-1, N)
    B = x2d.shape[0]
    w = weight.reshape(N)
    b2 = bias.reshape(1, 1).astype(jnp.float32)

    def xla_rows(rows2d):
        # Trivial fallback for tiny row counts (< k leftovers / micro batches).
        acc = jnp.dot(rows2d, w.reshape(N, 1), preferred_element_type=jnp.float32)
        return (acc + b2[0, 0]).astype(x.dtype).reshape(-1)

    if B * N <= xla_fastpath_elems:
        y = xla_rows(x2d)
    else:
        # Lane packing: fold k batch rows into the 128-lane axis for any N <= 128.
        k = max(1, 128 // N) if N <= 128 else 1
        B_main = (B // k) * k
        if B_main == 0:
            y = xla_rows(x2d)
        else:
            rows, lanes = B_main // k, k * N
            # B % k == 0: whole-buffer reshape (free, row-major).  Otherwise the
            # aligned prefix goes through the packed kernel and the <= k-1
            # leftover rows are a trivial XLA dot — no jnp.pad copy of x.
            x_main = x2d if B_main == B else x2d[:B_main]
            x_packed = x_main.reshape(rows, lanes)
            if k > 1:
                # Block-diagonal weight (k*N, k): col j holds w in rows [j*N,(j+1)*N).
                w_packed = jnp.kron(jnp.eye(k, dtype=w.dtype), w.reshape(N, 1))
            else:
                w_packed = w.reshape(N, 1)

            y_main = _pallas_linear(x_packed, w_packed, b2,
                                    block_rows=block_rows,
                                    block_cols=block_cols).reshape(B_main)
            if B_main == B:
                y = y_main
            else:
                y = jnp.concatenate([y_main, xla_rows(x2d[B_main:])], axis=0)

    y = y.reshape(orig_shape[:-1]) if len(orig_shape) > 1 else y.reshape(())
    return jnp.squeeze(y)   # matches torch .squeeze()


# ----------------------------------------------------------------------------
# Self-test
# ----------------------------------------------------------------------------
if __name__ == "__main__":
    key = jax.random.PRNGKey(0)

    def make_case(case_key, batch, num_scores):
        k_x, k_w, k_b = jax.random.split(case_key, 3)
        bound = 1.0 / (num_scores ** 0.5)            # nn.Linear-style init
        weight = jax.random.uniform(k_w, (1, num_scores), jnp.float32, -bound, bound)
        bias = jax.random.uniform(k_b, (1,), jnp.float32, -bound, bound)
        x = jax.random.normal(k_x, (batch, num_scores), jnp.float32)
        return x, weight, bias

    cases = [
        # (batch, num_scores, kwargs)
        (512, 32, {"xla_fastpath_elems": 0}),                    # packed k=4, 2 row tiles
        (203, 32, {"xla_fastpath_elems": 0}),                    # unaligned B: prefix + XLA tail
        (40, 48, {"xla_fastpath_elems": 0}),                     # generalized packing k=2 (lanes=96)
        (32, 200, {"xla_fastpath_elems": 0}),                    # unpacked, N>128, no reduction
        (64, 600, {"xla_fastpath_elems": 0, "block_cols": 256}),  # K-reduction + masked partial K block
        (7, 32, {"xla_fastpath_elems": 0}),                      # tiny unaligned (rows=1 tile + tail)
        (1, 32, {}),                                             # XLA fast path, squeeze -> scalar
    ]

    for batch, num_scores, kwargs in cases:
        key, sub = jax.random.split(key)
        x, weight, bias = make_case(sub, batch, num_scores)
        y = jax.block_until_ready(mixing_model_forward(x, weight, bias, **kwargs))
        y_ref = jnp.squeeze(x @ weight.T + bias)
        assert y.shape == y_ref.shape, (batch, num_scores, y.shape, y_ref.shape)
        assert jnp.allclose(y, y_ref, atol=1e-4, rtol=1e-4), (batch, num_scores)

    print("KERNEL_OK")
</pallas_src>

<mosaic_0001>
module attributes {stable_mosaic.version = 11 : i64} {
  func.func @_linear_kernel(%arg0: i32, %arg1: memref<64x128xf32, #tpu.memory_space<vmem>>, %arg2: memref<128x4xf32, #tpu.memory_space<vmem>>, %arg3: memref<1x1xf32, #tpu.memory_space<smem>>, %arg4: memref<64x4xf32, #tpu.memory_space<vmem>>) attributes {dimension_semantics = [#tpu.dimension_semantics<parallel>], iteration_bounds = array<i64: 2>, scalar_prefetch = 0 : i64, scratch_operands = 0 : i64, tpu.core_type = #tpu.core_type<tc>, window_params = [{transform_indices = @transform_0, window_bounds = array<i64: 64, 128>}, {pipeline_mode = #tpu.pipeline_mode<synchronous>, transform_indices = @transform_1, window_bounds = array<i64: 128, 4>}, {transform_indices = @transform_2, window_bounds = array<i64: 1, 1>}, {transform_indices = @transform_3, window_bounds = array<i64: 64, 4>}]} {
    %c0 = arith.constant 0 : index
    %c0_0 = arith.constant 0 : index
    %0 = vector.load %arg1[%c0, %c0_0] : memref<64x128xf32, #tpu.memory_space<vmem>>, vector<64x128xf32>
    %c0_1 = arith.constant 0 : index
    %c0_2 = arith.constant 0 : index
    %1 = vector.load %arg2[%c0_1, %c0_2] : memref<128x4xf32, #tpu.memory_space<vmem>>, vector<128x4xf32>
    %cst = arith.constant dense<0.000000e+00> : vector<64x4xf32>
    %2 = tpu.matmul %0, %1, %cst {dimension_numbers = #tpu.dot_dimension_numbers<[1], [0], [0], [1], [0, 0, 1, 1], [], []>} : vector<64x128xf32>, vector<128x4xf32>, vector<64x4xf32> -> vector<64x4xf32>
    %c0_3 = arith.constant 0 : index
    %c0_4 = arith.constant 0 : index
    %3 = memref.load %arg3[%c0_3, %c0_4] : memref<1x1xf32, #tpu.memory_space<smem>>
    %4 = vector.broadcast %3 : f32 to vector<64x4xf32>
    %5 = arith.addf %2, %4 : vector<64x4xf32>
    %c0_5 = arith.constant 0 : index
    %c0_6 = arith.constant 0 : index
    %6 = vector.load %arg4[%c0_5, %c0_6] : memref<64x4xf32, #tpu.memory_space<vmem>>, vector<64x4xf32>
    tpu.vector_store %arg4[%c0_5, %c0_6], %5 {strides = array<i32>} : memref<64x4xf32, #tpu.memory_space<vmem>>, vector<64x4xf32>,
    return
  }
  func.func @transform_0(%arg0: i32) -> (i32, i32) {
    %c0_i32 = arith.constant 0 : i32
    %c0_i32_0 = arith.constant 0 : i32
    return %arg0, %c0_i32 : i32, i32
  }
  func.func @transform_1(%arg0: i32) -> (i32, i32) {
    %c0_i32 = arith.constant 0 : i32
    %c0_i32_0 = arith.constant 0 : i32
    %c0_i32_1 = arith.constant 0 : i32
    return %c0_i32, %c0_i32_0 : i32, i32
  }
  func.func @transform_2(%arg0: i32) -> (i32, i32) {
    %c0_i32 = arith.constant 0 : i32
    %c0_i32_0 = arith.constant 0 : i32
    %c0_i32_1 = arith.constant 0 : i32
    return %c0_i32, %c0_i32_0 : i32, i32
  }
  func.func @transform_3(%arg0: i32) -> (i32, i32) {
    %c0_i32 = arith.constant 0 : i32
    %c0_i32_0 = arith.constant 0 : i32
    return %arg0, %c0_i32 : i32, i32
  }
}

</mosaic_0001>

<bundles_post_ra>
// kernel: tpu_custom_call.1
= control target key start
LH: loop header
LB: loop body
LE: loop exit
PB: predicated region body
PF: predicated region fallthrough
CT: control target
= control target key end

     0   :  { %s537_s14 = smov 0   ;;  %s627_s0 = inlined_call_operand.vmem [shape: f32[128,128], index: 0, kind: input, shape index: {}]   ;;  %s628_s1 = inlined_call_operand.vmem [shape: f32[128,4], index: 1, kind: input, shape index: {}]   ;;  %s629_s2 = inlined_call_operand.<no memory space> [shape: f32[1,1], index: 2, kind: input, shape index: {}]   ;;  %s630_s3 = inlined_call_operand.vmem [shape: f32[128,4], index: 3, kind: output, shape index: {}]  }
   0x1   :  { %8 = sst [smem:[#allocation2]] %s629_s2 }
   0x2 LB: > { %s371_s15 = sadd.s32 4294967295, %s512_s14   ;;  %p375_p0 = scmp.ge.s32.totalorder %s512_s14, 1  ;;  %s512_s14 = sphi %s537_s14, %s14_s14  }
   0x3   : > { %p139_p1 = scmp.lt.s32.totalorder %s512_s14, 3 }
   0x5   : > { %p140_p2 = pnand %p375_p0, %p139_p1 }
   0x6   : > { %v183_v0 = vld [vmem:[%s628_s1] sm:$0xff] (!%p140_p2)  ;;  %v184_v1 = vld [vmem:[%s628_s1 + $0x8] sm:$0xff] (!%p140_p2)  ;;  %v185_v2 = vld [vmem:[%s628_s1 + $0x10] sm:$0xff] (!%p140_p2)  ;;  %s376_s21 = sshll.u32 (!%p140_p2), %s371_s15, 3  ;;  %s199_s26 = sld [smem:[#allocation2]] (!%p140_p2)  ;;  %vm306_vm0 = vcmask (!%p140_p2), 31744  }
   0x7   : > { %143 = sbr.rel (%p140_p2) target bundleno = 262 (0x106), region = 32  ;;  %v450_v3 = vpack.c.bf16 (!%p140_p2), %v184_v1, %v183_v0  ;;  %v186_v4 = vld [vmem:[%s628_s1 + $0x18] sm:$0xff] (!%p140_p2)  ;;  %p164_p3 = scmp.lt.s32.totalorder (!%p140_p2), %s376_s21, 15  ;;  %v187_v6 = vld [vmem:[%s628_s1 + $0x20] sm:$0xff] (!%p140_p2)  ;;  %v188_v7 = vld [vmem:[%s628_s1 + $0x28] sm:$0xff] (!%p140_p2) }
   0x8   : > { %v454_v5 = vpack.c.bf16 (!%p140_p2), %v186_v4, %v185_v2  ;;  %v458_v8 = vpack.c.bf16 (!%p140_p2), %v188_v7, %v187_v6  ;;  %v189_v9 = vld [vmem:[%s628_s1 + $0x30] sm:$0xff] (!%p140_p2)  ;;  %v190_v10 = vld [vmem:[%s628_s1 + $0x38] sm:$0xff] (!%p140_p2)  ;;  %v191_v14 = vld [vmem:[%s628_s1 + $0x40] sm:$0xff] (!%p140_p2) }
   0x9   : > { %451 = vmatprep.subr.bf16.mxu0 (!%p140_p2), %v450_v3  ;;  %482 = vmatprep.subr.bf16.mxu1 (!%p140_p2), %v450_v3  ;;  %v462_v13 = vpack.c.bf16 (!%p140_p2), %v190_v10, %v189_v9  ;;  %v192_v15 = vld [vmem:[%s628_s1 + $0x48] sm:$0xff] (!%p140_p2)  ;;  %v193_v17 = vld [vmem:[%s628_s1 + $0x50] sm:$0xff] (!%p140_p2)  ;;  %v194_v18 = vld [vmem:[%s628_s1 + $0x58] sm:$0xff] (!%p140_p2) }
   0xa   : > { %453 = vmatpush3.bf16.msra.mxu0 (!%p140_p2), %v450_v3  ;;  %490 = vmatpush3.bf16.msra.mxu1 (!%p140_p2), %v450_v3  ;;  %v466_v16 = vpack.c.bf16 (!%p140_p2), %v192_v15, %v191_v14  ;;  %v470_v19 = vpack.c.bf16 (!%p140_p2), %v194_v18, %v193_v17  ;;  %v195_v20 = vld [vmem:[%s628_s1 + $0x60] sm:$0xff] (!%p140_p2)  ;;  %v196_v21 = vld [vmem:[%s628_s1 + $0x68] sm:$0xff] (!%p140_p2)  ;;  %v197_v23 = vld [vmem:[%s628_s1 + $0x70] sm:$0xff] (!%p140_p2) }
   0xb   : > { %455 = vmatprep.subr.bf16.mxu0 (!%p140_p2), %v454_v5  ;;  %483 = vmatprep.subr.bf16.mxu1 (!%p140_p2), %v454_v5  ;;  %v474_v22 = vpack.c.bf16 (!%p140_p2), %v196_v21, %v195_v20  ;;  %v198_v24 = vld [vmem:[%s628_s1 + $0x78] sm:$0xff] (!%p140_p2) }
   0xc   : > { %v478_v25 = vpack.c.bf16 (!%p140_p2), %v198_v24, %v197_v23  ;;  %v200_v32 = vstv (!%p140_p2), %s199_s26 }
   0xe   : > { %s632_s21 = smov (!%p164_p3, %s376_s21), 15  ;;  %457 = vmatpush3.bf16.msra.mxu0 %v454_v5  ;;  %491 = vmatpush3.bf16.msra.mxu1 %v454_v5 }
   0xf   : > { %s377_s28 = sshll.u32 %s632_s21, 3  ;;  %459 = vmatprep.subr.bf16.mxu0 %v458_v8  ;;  %484 = vmatprep.subr.bf16.mxu1 %v458_v8 }
  0x10   : > { %s577_s8 = scalar_lea.vmem %s627_s0, %s377_s28  ;;  %s173_s30 = scalar_lea.vmem %s630_s3, %s377_s28 }
  0x11   : > { %v175_v11 = vld [vmem:[%s577_s8] sm:$0xff]  ;;  %v176_v26 = vld [vmem:[%s577_s8 + $0x8] sm:$0xff]  ;;  %v177_v28 = vld [vmem:[%s577_s8 + $0x10] sm:$0xff] }
  0x12   : > { %v179_v12 = vld [vmem:[%s577_s8 + $0x20] sm:$0xff]  ;;  %438 = vmatprep.mubr.f32.mxu0 %v175_v11  ;;  %461 = vmatpush3.bf16.msra.mxu0 %v458_v8  ;;  %v180_v27 = vld [vmem:[%s577_s8 + $0x28] sm:$0xff]  ;;  %v181_v29 = vld [vmem:[%s577_s8 + $0x30] sm:$0xff] }
  0x13   : > { %444 = vmatprep.mubr.f32.mxu1 %v179_v12  ;;  %492 = vmatpush3.bf16.msra.mxu1 %v458_v8  ;;  %v178_v30 = vld [vmem:[%s577_s8 + $0x18] sm:$0xff] }
  0x14   : > { %463 = vmatprep.subr.bf16.mxu0 %v462_v13  ;;  %485 = vmatprep.subr.bf16.mxu1 %v462_v13  ;;  %v182_v31 = vld [vmem:[%s577_s8 + $0x38] sm:$0xff] }
  0x16   : > { %465 = vmatpush3.bf16.msra.mxu0 %v462_v13 }
  0x17   : > { %493 = vmatpush3.bf16.msra.mxu1 %v462_v13  ;;  %467 = vmatprep.subr.bf16.mxu0 %v466_v16 }
  0x18   : > { %486 = vmatprep.subr.bf16.mxu1 %v466_v16 }
  0x1a   : > { %469 = vmatpush3.bf16.msra.mxu0 %v466_v16 }
  0x1b   : > { %494 = vmatpush3.bf16.msra.mxu1 %v466_v16  ;;  %471 = vmatprep.subr.bf16.mxu0 %v470_v19 }
  0x1c   : > { %487 = vmatprep.subr.bf16.mxu1 %v470_v19 }
  0x1e   : > { %473 = vmatpush3.bf16.msra.mxu0 %v470_v19 }
  0x1f   : > { %495 = vmatpush3.bf16.msra.mxu1 %v470_v19  ;;  %475 = vmatprep.subr.bf16.mxu0 %v474_v22 }
  0x20   : > { %488 = vmatprep.subr.bf16.mxu1 %v474_v22 }
  0x22   : > { %477 = vmatpush3.bf16.msra.mxu0 %v474_v22 }
  0x23   : > { %496 = vmatpush3.bf16.msra.mxu1 %v474_v22  ;;  %479 = vmatprep.subr.bf16.mxu0 %v478_v25 }
  0x24   : > { %489 = vmatprep.subr.bf16.mxu1 %v478_v25 }
  0x26   : > { %481 = vmatpush3.bf16.msra.mxu0 %v478_v25 }
  0x27   : > { %497 = vmatpush3.bf16.msra.mxu1 %v478_v25 }
  0x29   : > { %439 = vmatmul.mubr.f32.vlgmr.msra.gmra.mrb[0].mxu0 %v176_v26 }
  0x2a   : > { %445 = vmatmul.mubr.f32.vlgmr.msra.gmra.mrb[0].mxu1 %v180_v27  ;;  %441 = vmatprep.mubr.f32.mxu0 %v177_v28 }
  0x2b   : > { %447 = vmatprep.mubr.f32.mxu1 %v181_v29 }
  0x2d   : > { %442 = vmatmul.mubr.f32.gmra.mrb[2].mxu0 %v178_v30 }
  0x2e   : > { %448 = vmatmul.mubr.f32.gmra.mrb[2].mxu1 %v182_v31 }
  0xfc   : > { %v440_v33 = vpop.f32.mrb[0].mxu0 }
  0xfd   : > { %v446_v34 = vpop.f32.mrb[0].mxu1  ;;  %v273_v35 = vadd.f32 %v440_v33, %v200_v32  ;;  %v267_v37 = vpop.f32.mrb[1].mxu0 }
  0xfe   : > { %v293_v36 = vadd.f32 %v446_v34, %v200_v32  ;;  %v287_v38 = vpop.f32.mrb[1].mxu1  ;;  %v268_v39 = vadd.f32 %v267_v37, %v200_v32 }
  0xff   : > { %v288_v40 = vadd.f32 %v287_v38, %v200_v32  ;;  %308 = vst.msk [vmem:[%s173_s30 + $0x8] sm:$0xff] %vm306_vm0, %v273_v35 }
 0x100   : > { %312 = vst.msk [vmem:[%s173_s30 + $0x28] sm:$0xff] %vm306_vm0, %v293_v36  ;;  %307 = vst.msk [vmem:[%s173_s30] sm:$0xff] %vm306_vm0, %v268_v39  ;;  %v443_v41 = vpop.f32.mrb[2].mxu0 }
 0x101   : > { %311 = vst.msk [vmem:[%s173_s30 + $0x20] sm:$0xff] %vm306_vm0, %v288_v40  ;;  %v449_v42 = vpop.f32.mrb[2].mxu1  ;;  %v283_v43 = vadd.f32 %v443_v41, %v200_v32  ;;  %v277_v45 = vpop.f32.mrb[3].mxu0 }
 0x102   : > { %v303_v44 = vadd.f32 %v449_v42, %v200_v32  ;;  %v297_v46 = vpop.f32.mrb[3].mxu1  ;;  %v278_v47 = vadd.f32 %v277_v45, %v200_v32 }
 0x103   : > { %v298_v48 = vadd.f32 %v297_v46, %v200_v32  ;;  %310 = vst.msk [vmem:[%s173_s30 + $0x18] sm:$0xff] %vm306_vm0, %v283_v43 }
 0x104   : > { %314 = vst.msk [vmem:[%s173_s30 + $0x38] sm:$0xff] %vm306_vm0, %v303_v44  ;;  %309 = vst.msk [vmem:[%s173_s30 + $0x10] sm:$0xff] %vm306_vm0, %v278_v47 }
 0x105   : > { %313 = vst.msk [vmem:[%s173_s30 + $0x30] sm:$0xff] %vm306_vm0, %v298_v48 }
 0x106 PF: > { %s14_s14 = sadd.s32 1, %s512_s14  }
 0x107   : > { %p11_p4 = scmp.ge.s32.totalorder %s14_s14, 4  }
 0x109   :  { %13 = sbr.rel (!%p11_p4) target bundleno = 2 (0x2), region = 62 }

</bundles_post_ra>
